<compile_context>
chip_gen: v5e
topology: v5e:2x2
jax: 0.10.0
libtpu: 0.0.40
codegen_flags: <defaults>
</compile_context>

<pallas_src>
import jax
import jax.numpy as jnp
from jax.experimental import pallas as pl
from jax.experimental.pallas import tpu as pltpu

_LANES = 128
_TARGET_TILE_BYTES = 2 * 1024 * 1024      # ~2 MiB per streamed input buffer
_MAX_BATCH_UNROLL = 8                     # max images per grid step (static unroll)


def _cdiv(a, b):
    return -(-a // b)


def _round_up(x, m):
    return _cdiv(x, m) * m


def _largest_divisor_leq(n, cap):
    for d in range(min(n, max(cap, 1)), 0, -1):
        if n % d == 0:
            return d
    return 1


def _make_kernel(cast_x_to_bf16, f32_highest):
    precision = jax.lax.Precision.HIGHEST if f32_highest else None

    def kernel(x_ref, w_ref, shift_ref, o_ref):
        # x_ref:     (B, C_in, L)   activation block, spatial on lanes
        # w_ref:     (C_out, C_in)  1x1 conv weight with BN scale folded in (resident)
        # shift_ref: (C_out, 1)     folded BN shift = beta - mean * scale (f32)
        # o_ref:     (B, C_out, L)  lane-dense output block
        w = w_ref[...]
        shift = shift_ref[...]
        for b in range(x_ref.shape[0]):          # B is a small compile-time constant
            x = x_ref[b]                          # (C_in, L)
            if cast_x_to_bf16:
                x = x.astype(jnp.bfloat16)
            y = jnp.dot(w, x, preferred_element_type=jnp.float32,
                        precision=precision)
            o_ref[b] = jnp.maximum(y + shift, 0.0).astype(o_ref.dtype)

    return kernel


def dim_reduce_forward(x_nchw, conv_w, bn_gamma, bn_beta, bn_mean, bn_var,
                       eps=1e-5):
    """x_nchw: (N, C_in, H, W); conv_w: (C_out, C_in, 1, 1)."""
    N, C_in, H, W = x_nchw.shape
    C_out = conv_w.shape[0]
    HW = H * W
    dtype = x_nchw.dtype
    itemsize = jnp.dtype(dtype).itemsize

    # ---- Fold BatchNorm (eval mode) into weight scale + per-channel shift ----
    scale = (bn_gamma.astype(jnp.float32) /
             jnp.sqrt(bn_var.astype(jnp.float32) + eps))
    shift = (bn_beta.astype(jnp.float32) -
             bn_mean.astype(jnp.float32) * scale).reshape(C_out, 1)
    w_mat = conv_w.reshape(C_out, C_in).astype(jnp.float32) * scale[:, None]

    # bf16 MXU operands only when the matmul is big enough to be compute-bound
    # (v6e/v7x native bf16 MXU); otherwise keep f32 + HIGHEST precision.
    use_bf16_mxu = (dtype == jnp.float32) and (C_in * C_out >= (1 << 18))
    w_dtype = jnp.bfloat16 if use_bf16_mxu else dtype
    w_folded = w_mat.astype(w_dtype)                         # (C_out, C_in)
    f32_highest = (dtype == jnp.float32) and not use_bf16_mxu

    # NCHW-native: flatten spatial dims only (free reshape, no transpose/pad).
    x_flat = x_nchw.reshape(N, C_in, HW)

    per_image_in = C_in * HW * itemsize

    if per_image_in <= _TARGET_TILE_BYTES:
        # -------- Fast / common path: full-HW blocks, batch images per step.
        # Full-array last-two dims bypass the (8,128) divisibility rule, so no
        # padding is needed for ragged HW (e.g. 24x8=192).
        cap = max(1, _TARGET_TILE_BYTES // per_image_in)
        cap = min(cap, _MAX_BATCH_UNROLL)
        cap = min(cap, max(1, _cdiv(N, 8)))   # keep >= ~8 grid steps for megacore
        b_tile = _largest_divisor_leq(N, cap)
        grid = (N // b_tile,)
        in_specs = [
            pl.BlockSpec((b_tile, C_in, HW), lambda i: (i, 0, 0)),
            pl.BlockSpec((C_out, C_in), lambda i: (0, 0)),
            pl.BlockSpec((C_out, 1), lambda i: (0, 0)),
        ]
        out_spec = pl.BlockSpec((b_tile, C_out, HW), lambda i: (i, 0, 0))
        semantics = ("parallel",)
        in_tile_bytes = b_tile * per_image_in
        out_tile_bytes = b_tile * C_out * HW * itemsize
    else:
        # -------- Large feature map: tile the lane (spatial) axis.
        cols = _TARGET_TILE_BYTES // (C_in * itemsize)
        if cols >= 512:
            thw = (cols // 512) * 512
        elif cols >= _LANES:
            thw = (cols // _LANES) * _LANES
        else:
            thw = _LANES
        thw = min(thw, _round_up(HW, _LANES))
        n_tiles = _cdiv(HW, thw)
        grid = (N, n_tiles)
        # Ragged last tile: Pallas drops out-of-bounds writes and reads of the
        # partial block are unused garbage columns; channel mixing never mixes
        # spatial columns, so results stay exact without a host-side pad/slice.
        in_specs = [
            pl.BlockSpec((1, C_in, thw), lambda n, j: (n, 0, j)),
            pl.BlockSpec((C_out, C_in), lambda n, j: (0, 0)),
            pl.BlockSpec((C_out, 1), lambda n, j: (0, 0)),
        ]
        out_spec = pl.BlockSpec((1, C_out, thw), lambda n, j: (n, 0, j))
        semantics = ("parallel", "parallel")
        in_tile_bytes = C_in * thw * itemsize
        out_tile_bytes = C_out * thw * itemsize

    # vmem limit from actual usage (double-buffered in/out + resident weight +
    # shift) with ~50% slack, clamped to the v7x per-TensorCore 64 MiB budget.
    w_bytes = C_out * C_in * jnp.dtype(w_dtype).itemsize
    usage = (2 * in_tile_bytes + 2 * out_tile_bytes + 2 * w_bytes
             + 2 * C_out * 4)
    vmem_limit = int(min(64 * 1024 * 1024,
                         max(usage * 3 // 2, 16 * 1024 * 1024)))

    kernel = _make_kernel(use_bf16_mxu, f32_highest)
    out_flat = pl.pallas_call(
        kernel,
        out_shape=jax.ShapeDtypeStruct((N, C_out, HW), dtype),
        grid_spec=pltpu.PrefetchScalarGridSpec(
            num_scalar_prefetch=0,
            grid=grid,
            in_specs=in_specs,
            out_specs=out_spec,
        ),
        compiler_params=pltpu.CompilerParams(
            dimension_semantics=semantics,
            vmem_limit_bytes=vmem_limit,
        ),
    )(x_flat, w_folded, shift)

    return out_flat.reshape(N, C_out, H, W)


def _reference_forward(x_nchw, conv_w, bn_gamma, bn_beta, bn_mean, bn_var,
                       eps=1e-5):
    # Pure-JAX reference (1x1 conv + eval BN + ReLU), NCHW.
    C_out, C_in = conv_w.shape[0], conv_w.shape[1]
    w = conv_w.reshape(C_out, C_in)
    y = jnp.einsum("nchw,oc->nohw", x_nchw, w,
                   precision=jax.lax.Precision.HIGHEST)
    s = bn_gamma / jnp.sqrt(bn_var + eps)
    scale = s.reshape(1, C_out, 1, 1)
    shift = (bn_beta - bn_mean * s).reshape(1, C_out, 1, 1)
    return jnp.maximum(y * scale + shift, 0.0)


if __name__ == "__main__":
    key = jax.random.PRNGKey(0)
    k_x, k_w, k_g = jax.random.split(key, 3)

    N, C_in, H, W = 2, 4, 16, 16
    C_out = 8

    x = jax.random.normal(k_x, (N, C_in, H, W), dtype=jnp.float32)

    # Conv2d weight: kaiming_normal_(mode='fan_in'), fan_in = C_in*1*1,
    # gain = sqrt(2) -> std = sqrt(2 / fan_in).
    std = (2.0 / C_in) ** 0.5
    conv_w = std * jax.random.normal(k_w, (C_out, C_in, 1, 1), dtype=jnp.float32)

    # BatchNorm2d params: gamma ~ N(1, 0.02), beta = 0,
    # running_mean = 0, running_var = 1 (fresh init, eval semantics).
    bn_gamma = 1.0 + 0.02 * jax.random.normal(k_g, (C_out,), dtype=jnp.float32)
    bn_beta = jnp.zeros((C_out,), dtype=jnp.float32)
    bn_mean = jnp.zeros((C_out,), dtype=jnp.float32)
    bn_var = jnp.ones((C_out,), dtype=jnp.float32)

    out = dim_reduce_forward(x, conv_w, bn_gamma, bn_beta, bn_mean, bn_var)
    out = jax.block_until_ready(out)

    ref = _reference_forward(x, conv_w, bn_gamma, bn_beta, bn_mean, bn_var)
    assert out.shape == (N, C_out, H, W)
    assert jnp.allclose(out, ref, atol=1e-5, rtol=1e-5)

    print("KERNEL_OK")
</pallas_src>

<mosaic_0001>
module attributes {stable_mosaic.version = 11 : i64} {
  func.func @kernel(%arg0: i32, %arg1: memref<1x4x256xf32, #tpu.memory_space<vmem>>, %arg2: memref<8x4xf32, #tpu.memory_space<vmem>>, %arg3: memref<8x1xf32, #tpu.memory_space<vmem>>, %arg4: memref<1x8x256xf32, #tpu.memory_space<vmem>>) attributes {dimension_semantics = [#tpu.dimension_semantics<parallel>], iteration_bounds = array<i64: 2>, scalar_prefetch = 0 : i64, scratch_operands = 0 : i64, tpu.core_type = #tpu.core_type<tc>, window_params = [{transform_indices = @transform_0, window_bounds = array<i64: 1, 4, 256>}, {pipeline_mode = #tpu.pipeline_mode<synchronous>, transform_indices = @transform_1, window_bounds = array<i64: 8, 4>}, {pipeline_mode = #tpu.pipeline_mode<synchronous>, transform_indices = @transform_2, window_bounds = array<i64: 8, 1>}, {transform_indices = @transform_3, window_bounds = array<i64: 1, 8, 256>}]} {
    %c0 = arith.constant 0 : index
    %c0_0 = arith.constant 0 : index
    %0 = vector.load %arg2[%c0, %c0_0] : memref<8x4xf32, #tpu.memory_space<vmem>>, vector<8x4xf32>
    %c0_1 = arith.constant 0 : index
    %c0_2 = arith.constant 0 : index
    %1 = vector.load %arg3[%c0_1, %c0_2] : memref<8x1xf32, #tpu.memory_space<vmem>>, vector<8x1xf32>
    %c0_3 = arith.constant 0 : index
    %c0_4 = arith.constant 0 : index
    %c0_5 = arith.constant 0 : index
    %2 = vector.load %arg1[%c0_3, %c0_4, %c0_5] : memref<1x4x256xf32, #tpu.memory_space<vmem>>, vector<1x4x256xf32>
    %3 = vector.shape_cast %2 : vector<1x4x256xf32> to vector<4x256xf32>
    %cst = arith.constant dense<0.000000e+00> : vector<8x256xf32>
    %4 = tpu.matmul %0, %3, %cst {dimension_numbers = #tpu.dot_dimension_numbers<[1], [0], [0], [1], [0, 0, 1, 1], [], []>, precision = #tpu.contract_precision<fp32>} : vector<8x4xf32>, vector<4x256xf32>, vector<8x256xf32> -> vector<8x256xf32>
    %5 = vector.broadcast %1 : vector<8x1xf32> to vector<8x256xf32>
    %6 = arith.addf %4, %5 : vector<8x256xf32>
    %cst_6 = arith.constant 0.000000e+00 : f32
    %7 = vector.broadcast %cst_6 : f32 to vector<8x256xf32>
    %8 = arith.maximumf %6, %7 : vector<8x256xf32>
    %c0_7 = arith.constant 0 : index
    %c0_8 = arith.constant 0 : index
    %c0_9 = arith.constant 0 : index
    %9 = vector.load %arg4[%c0_7, %c0_8, %c0_9] : memref<1x8x256xf32, #tpu.memory_space<vmem>>, vector<1x8x256xf32>
    %10 = vector.shape_cast %9 : vector<1x8x256xf32> to vector<8x256xf32>
    %11 = vector.shape_cast %8 : vector<8x256xf32> to vector<1x8x256xf32>
    tpu.vector_store %arg4[%c0_7, %c0_8, %c0_9], %11 {strides = array<i32>} : memref<1x8x256xf32, #tpu.memory_space<vmem>>, vector<1x8x256xf32>,
    return
  }
  func.func @transform_0(%arg0: i32) -> (i32, i32, i32) {
    %c0_i32 = arith.constant 0 : i32
    %c0_i32_0 = arith.constant 0 : i32
    %c0_i32_1 = arith.constant 0 : i32
    return %arg0, %c0_i32, %c0_i32_0 : i32, i32, i32
  }
  func.func @transform_1(%arg0: i32) -> (i32, i32) {
    %c0_i32 = arith.constant 0 : i32
    %c0_i32_0 = arith.constant 0 : i32
    %c0_i32_1 = arith.constant 0 : i32
    return %c0_i32, %c0_i32_0 : i32, i32
  }
  func.func @transform_2(%arg0: i32) -> (i32, i32) {
    %c0_i32 = arith.constant 0 : i32
    %c0_i32_0 = arith.constant 0 : i32
    %c0_i32_1 = arith.constant 0 : i32
    return %c0_i32, %c0_i32_0 : i32, i32
  }
  func.func @transform_3(%arg0: i32) -> (i32, i32, i32) {
    %c0_i32 = arith.constant 0 : i32
    %c0_i32_0 = arith.constant 0 : i32
    %c0_i32_1 = arith.constant 0 : i32
    return %arg0, %c0_i32, %c0_i32_0 : i32, i32, i32
  }
}

</mosaic_0001>

<bundles_post_ra>
// kernel: tpu_custom_call.1
= control target key start
LH: loop header
LB: loop body
LE: loop exit
PB: predicated region body
PF: predicated region fallthrough
CT: control target
= control target key end

     0   :  { %8 = vsyncpa [#allocation3], 0  ;;  %s793_s0 = inlined_call_operand.vmem [shape: f32[2,4,256], index: 0, kind: input, shape index: {}]   ;;  %s794_s1 = inlined_call_operand.vmem [shape: f32[8,4], index: 1, kind: input, shape index: {}]   ;;  %s795_s2 = inlined_call_operand.vmem [shape: f32[8,1], index: 2, kind: input, shape index: {}]   ;;  %s796_s3 = inlined_call_operand.hbm [shape: f32[2,8,256], index: 3, kind: output, shape index: {}]  }
   0x1   :  { %10 = vsyncpa [#allocation3 + $0x1], 0  ;;  %s702_s12 = smov 0   ;;  %s704_s13 = smov 0  }
   0x2   :  { %s706_s14 = smov 0   ;;  %s708_s15 = smov 0  }
   0x3 LB: > { %s723_s16 = sadd.s32 4294967295, %s679_s15   ;;  %s562_s17 = sadd.s32 4294967294, %s679_s15   ;;  %s679_s15 = sphi %s708_s15, %s802_s15   ;;  %s675_s14 = sphi %s706_s14, %s801_s14   ;;  %s671_s13 = sphi %s704_s13, %s800_s13   ;;  %s667_s12 = sphi %s702_s12, %s799_s12  }
   0x4   : > { %s727_s18 = sadd.s32 1, %s679_s15   ;;  %s91_s19 = sadd.s32 1, %s675_s14 }
   0x5   : > { %s88_s20 = ssub.s32 %s679_s15, %s727_s18  ;;  %p101_p0 = scmp.ne.s32.totalorder %s675_s14, %s671_s13 }
   0x6   : > { %p89_p1 = scmp.eq.s32.totalorder %s88_s20, 0  ;;  %p102_p2 = scmp.eq.s32.totalorder %s723_s16, 1 }
   0x7   : > { %p107_p3 = scmp.ne.s32.totalorder %s671_s13, %s667_s12  ;;  %p108_p4 = scmp.eq.s32.totalorder %s562_s17, 1 }
   0x8   : > { %s738_s21 = scalar_select %p89_p1, %s675_s14, %s91_s19  }
   0x9   : > { %p740_p5 = por %p102_p2, %p101_p0  ;;  %p744_p6 = por %p108_p4, %p107_p3 }
   0xa   : > { %p565_p7 = scmp.ge.s32.totalorder %s679_s15, 1  ;;  %p140_p8 = scmp.lt.s32.totalorder %s679_s15, 3 }
   0xc   : > { %p141_p9 = pnand %p565_p7, %p140_p8 }
   0xd   : > { %p164_p10 = scmp.lt.s32.totalorder (!%p141_p9), %s723_s16, 1  ;;  %s161_s6 = sand.u32 (!%p141_p9), 1, %s671_s13  }
   0xe   : > { %144 = sbr.rel (%p141_p9) target bundleno = 197 (0xc5), region = 32  ;;  %s566_s7 = sshll.u32 (!%p141_p9), %s161_s6, 4 }
   0xf   : > { %s163_s8 = scalar_lea.vmem (!%p141_p9), [#allocation2], %s566_s7  ;;  %s575_s9 = sshll.u32 (!%p141_p9), %s723_s16, 4 }
  0x10   : > { %s498_s17 = scalar_lea.hbm (!%p141_p9), %s796_s3, %s575_s9  ;;  %s500_s19 = sshll.u32 (!%p141_p9), %s163_s8, 4  ;;  %s501_s19 = int_to_ptr.vmem [resolvable:$true] %s500_s19 }
  0x11   : > { %s502_s20 = sshll.u32 (!%p141_p9), %s498_s17, 4  ;;  %s487_s24 = scalar_lea.sflag (!%p141_p9), [#allocation3], %s161_s6  ;;  %s503_s20 = int_to_ptr.hbm [resolvable:$true] %s502_s20 }
  0x12   : > { %s631_s25 = sshra.s32 (!%p141_p9), %s503_s20, 4  ;;  %s637_s28 = scalar_lea.hbm (!%p141_p9), %s796_s3, 32  ;;  %s632_s25 = int_to_ptr.hbm [resolvable:$true] %s631_s25 }
  0x13   : > { %v169_v0 = vld [vmem:[%s794_s1] sm:$0xff]  ;;  %vm181_vm0 = vcmask 31744   ;;  %v681_v2 = vmov 0   ;;  %s165_s26 = scalar_select %p164_p10, %s723_s16, 1  ;;  %vm185_vm1 = vcmask 1043456  }
  0x14   : > { %v183_v1 = vsel %vm181_vm0, %v169_v0, 0  ;;  %616 = vset.pattern.permute.xlu0 %v681_v2  ;;  %v170_v4 = vld [vmem:[%s795_s2] sm:$0xff]  ;;  %s633_s16 = scalar_lea.hbm %s632_s25, 16  ;;  %p638_p0 = scmp.lt.s32.totalorder %s632_s25, %s796_s3 }
  0x15   : > { %v207_v3 = vand.u32 4294901760, %v183_v1  ;;  %s574_s29 = sshll.u32 %s165_s26, 3  ;;  %174 = vperm.xlu0 %616, %v170_v4   ;;  %p634_p11 = scmp.ne.s32.totalorder %s632_s25, %s633_s16 }
  0x16   : > { %s168_s5 = scalar_lea.vmem %s793_s0, %s574_s29  ;;  %p639_p1 = scmp.lt.s32.totalorder %s637_s28, %s633_s16 }
  0x17   : > { %v208_v5 = vsub.f32 %v183_v1, %v207_v3  ;;  %v171_v6 = vld [vmem:[%s168_s5] sm:$0xff]  ;;  %p635_p12 = pnand %p634_p11, %p740_p5 }
  0x18   : > { %178 = vst [vmem:[#allocation1] ss:$2 sm:$0xff] %v171_v6  ;;  %p640_p2 = por %p639_p1, %p638_p0 }
  0x19   : > { %v209_v7 = vand.u32 4294901760, %v208_v5  ;;  %p636_p13 = pneg %p635_p12 }
  0x1b   : > { %v210_v8 = vsub.f32 %v208_v5, %v209_v7  ;;  %p641_p3 = pnand %p640_p2, %p636_p13 }
  0x1d   : > { %v211_v13 = vand.u32 4294901760, %v210_v8 }
  0x1f   : > { %v179_v9 = vld.sshfl [vmem:[#allocation1] sm:$0xff pattern:$0x75316420]  ;;  %v180_v10 = vld.sshfl [vmem:[#allocation1 + $0x8] sm:$0xff pattern:$0x75316420] }
  0x20   : > { %v186_v11 = vsel %vm185_vm1, %v179_v9, 0  ;;  %v188_v12 = vsel %vm185_vm1, %v180_v10, 0 }
  0x21   : > { %v205_v14 = vand.u32 4294901760, %v186_v11  ;;  %v351_v15 = vand.u32 4294901760, %v188_v12 }
  0x23   : > { %v232_v16 = vsub.f32 %v186_v11, %v205_v14  ;;  %206 = vmatpush.msra.mxu0 %v205_v14  ;;  %282 = vmatpush.msra.mxu3 %v205_v14  ;;  %v378_v17 = vsub.f32 %v188_v12, %v351_v15 }
  0x24   : > { %212 = vmatmul.f32.vlgmr.msra.gmra.mxu0 %v211_v13  ;;  %286 = vmatmul.f32.vlgmr.msra.gmra.mxu3 %v209_v7 }
  0x25   : > { %259 = vmatpush.msra.mxu2 %v232_v16  ;;  %v233_v18 = vand.u32 4294901760, %v232_v16  ;;  %v379_v19 = vand.u32 4294901760, %v378_v17 }
  0x26   : > { %262 = vmatmul.f32.vlgmr.msra.gmra.mxu2 %v208_v5 }
  0x27   : > { %352 = vmatpush.msrb.mxu2 %v351_v15  ;;  %308 = vmatpush.msrb.mxu0 %v233_v18  ;;  %v380_v20 = vsub.f32 %v378_v17, %v379_v19  ;;  %v234_v21 = vsub.f32 %v232_v16, %v233_v18 }
  0x29   : > { %454 = vmatpush.msra.mxu2 %v379_v19  ;;  %405 = vmatpush.msra.mxu0 %v378_v17  ;;  %v381_v22 = vand.u32 4294901760, %v380_v20  ;;  %v235_v23 = vand.u32 4294901760, %v234_v21 }
  0x2b   : > { %382 = vmatpush.msrb.mxu3 %v381_v22  ;;  %236 = vmatpush.msra.mxu1 %v235_v23 }
  0x2c   : > { %238 = vmatmul.f32.vlgmr.msra.gmra.mxu1 %v207_v3  ;;  %310 = vmatmul.f32.vlgmr.msrb.gmra.mxu0 %v207_v3 }
  0x2d   : > { %330 = vmatpush.msrb.mxu1 %v205_v14  ;;  %384 = vmatmul.f32.vlgmr.msrb.gmra.mxu3 %v207_v3 }
  0x2e   : > { %358 = vmatmul.f32.vlgmr.msrb.gmra.mxu2 %v211_v13  ;;  %476 = vmatpush.msra.mxu3 %v351_v15 }
  0x2f   : > { %428 = vmatpush.msra.mxu1 %v351_v15 }
  0x34   : > { %332 = vmatmul.f32.vlgmr.msrb.gmra.mxu1 %v207_v3  ;;  %408 = vmatmul.f32.vlgmr.msra.gmra.mxu0 %v208_v5 }
  0x35   : > { %478 = vmatmul.f32.vlgmr.msra.gmra.mxu3 %v207_v3 }
  0x36   : > { %456 = vmatmul.f32.vlgmr.msra.gmra.mxu2 %v207_v3 }
  0x3c   : > { %432 = vmatmul.f32.vlgmr.msra.gmra.mxu1 %v209_v7 }
  0x87   : > { %v175_v25 = vpop.permute.xlu0 %174 }
  0xa1   : > { %v213_v24 = vpop.f32.mrf.mxu0 }
  0xa2   : > { %v214_v26 = vadd.f32 %v213_v24, %v175_v25 }
  0xa7   : > { %v287_v27 = vpop.f32.mrf.mxu3 }
  0xa9   : > { %v239_v28 = vpop.f32.mrf.mxu1  ;;  %v263_v29 = vpop.f32.mrf.mxu2 }
  0xaa   : > { %v240_v30 = vadd.f32 %v239_v28, %v214_v26  ;;  %v311_v31 = vpop.f32.mrf.mxu0 }
  0xac   : > { %v264_v32 = vadd.f32 %v263_v29, %v240_v30 }
  0xae   : > { %v288_v33 = vadd.f32 %v287_v27, %v264_v32 }
  0xb0   : > { %v312_v34 = vadd.f32 %v311_v31, %v288_v33  ;;  %v385_v35 = vpop.f32.mrf.mxu3 }
  0xb1   : > { %v333_v36 = vpop.f32.mrf.mxu1  ;;  %v359_v37 = vpop.f32.mrf.mxu2 }
  0xb2   : > { %v334_v38 = vadd.f32 %v333_v36, %v312_v34  ;;  %v360_v39 = vadd.f32 %v359_v37, %v175_v25  ;;  %v409_v40 = vpop.f32.mrf.mxu0 }
  0xb4   : > { %v482_v41 = vmax.f32 %v334_v38, 0.0  ;;  %v386_v42 = vadd.f32 %v385_v35, %v360_v39 }
  0xb6   : > { %484 = vst [vmem:[%s163_s8] sm:$0xff] %v482_v41  ;;  %v410_v43 = vadd.f32 %v409_v40, %v386_v42 }
  0xb8   : > { %v479_v47 = vpop.f32.mrf.mxu3 }
  0xb9   : > { %v433_v44 = vpop.f32.mrf.mxu1  ;;  %v457_v45 = vpop.f32.mrf.mxu2 }
  0xba   : > { %v434_v46 = vadd.f32 %v433_v44, %v410_v43 }
  0xbc   : > { %v458_v48 = vadd.f32 %v457_v45, %v434_v46 }
  0xbe   : > { %v480_v49 = vadd.f32 %v479_v47, %v458_v48 }
  0xc0   : > { %v483_v50 = vmax.f32 %v480_v49, 0.0 }
  0xc2   : > { %485 = vst [vmem:[%s163_s8 + $0x8] sm:$0xff] %v483_v50 }
  0xc3   : > { %644 = shalt.err (!%p641_p3)
}
  0xc4   : > { %576 = dma.vmem_to_hbm [thread:$0]  (%p740_p5), %s501_s19, 256, %s503_s20, %s487_s24  }
  0xc5 PF: > { %p582_p4 = scmp.ge.s32.totalorder %s679_s15, 2  ;;  %s514_s4 = sand.u32 1, %s667_s12  }
  0xc6   : > { %s515_s5 = scalar_lea.sflag [#allocation3], %s514_s4 }
  0xc7   : > { %p579_p7 = pnand %p582_p4, %p744_p6 }
  0xc9   : > { %p580_p8 = pneg %p579_p7 }
  0xcb   : > { %662 = dma.done.wait (%p580_p8), %s515_s5, 256  }
  0xcc   : > { %664 = vsyncadd (%p580_p8), %s515_s5, 4294967040  ;;  %p13_p9 = scmp.ge.s32.totalorder %s727_s18, 4   ;;  %s799_s12 = smov %s671_s13 }
  0xcd   : > { %s800_s13 = smov %s675_s14  ;;  %s801_s14 = smov %s738_s21 }
  0xce   : > { %s802_s15 = smov %s727_s18  ;;  %15 = sbr.rel (!%p13_p9) target bundleno = 3 (0x3), region = 67 }
  0xd3   :  { %521 = vsyncpa [#allocation3], 1 }
  0xd4   :  { %523 = vsyncpa [#allocation3 + $0x1], 1 }

</bundles_post_ra>
